<compile_context>
chip_gen: v7x
topology: tpu7x:2x2x1
jax: 0.10.0
libtpu: 0.0.40
codegen_flags: <defaults>
</compile_context>

<pallas_src>
import math

import jax
import jax.numpy as jnp
from jax.experimental import pallas as pl
from jax.experimental.pallas import tpu as pltpu


def _round_up(v, m):
    return (v + m - 1) // m * m


def _sag_score_kernel(w2_ref, xt_full_ref, xt_tile_ref, adjt_ref, score_ref):
    """score[0, tile] = tanh( sum_src adjT[src,dst]*(w_rel.x_src) + w_root.x_dst + b )

    w2_ref      : [8, F_pad]   row 0 = w_rel, row 1 = w_root (bias folded into
                               the constant ones-feature column), rows 2..7 = 0
    xt_full_ref : [F_pad, N_pad]   x transposed, all (source) nodes, f32
    xt_tile_ref : [F_pad, TILE]    x transposed, dst nodes of this tile, f32
    adjt_ref    : [N_pad, TILE]    adj_T[src, dst] edge counts, bf16
    score_ref   : [1, TILE]        lane-dense score row
    """
    w2 = w2_ref[...]                                                   # [8, F_pad]
    # Per-source-node relational projection (row 0 of the result).
    z_full = jnp.dot(w2, xt_full_ref[...],
                     preferred_element_type=jnp.float32)               # [8, N_pad]
    # Per-dst-node root projection + bias (row 1 of the result).
    z_tile = jnp.dot(w2, xt_tile_ref[...],
                     preferred_element_type=jnp.float32)               # [8, TILE]
    # Neighbour aggregation: row 0 = sum_src adjT[src, dst] * z_rel[src].
    agg = jnp.dot(z_full, adjt_ref[...].astype(jnp.float32),
                  preferred_element_type=jnp.float32)                  # [8, TILE]
    s = agg[0:1, :] + z_tile[1:2, :]                                   # [1, TILE]
    score_ref[...] = jnp.tanh(s)


def _pick_tile(n_pad, f_pad):
    """Largest 128-multiple column tile that keeps double-buffered VMEM modest."""
    for t in (512, 256, 128):
        if n_pad % t:
            continue
        need = (2 * n_pad * t * 2          # adj_T tile, bf16, double-buffered
                + 2 * f_pad * n_pad * 4    # resident x_T (full)
                + 2 * f_pad * t * 4)       # x_T tile
        if need <= (24 << 20):
            return t
    return 128


def sag_pool_scores(adj_t_bf16, x_t, w2):
    """Runs the Pallas kernel; returns the lane-dense score row [1, N_pad]."""
    n_pad = adj_t_bf16.shape[0]
    f_pad = x_t.shape[0]
    tile = _pick_tile(n_pad, f_pad)
    grid = (n_pad // tile,)

    need = (2 * n_pad * tile * 2 + 2 * f_pad * n_pad * 4 + 2 * f_pad * tile * 4
            + 2 * 8 * f_pad * 4 + 2 * 8 * tile * 4)
    vmem_limit = int(min(max(2 * need, 8 << 20), 64 << 20))

    return pl.pallas_call(
        _sag_score_kernel,
        out_shape=jax.ShapeDtypeStruct((1, n_pad), jnp.float32),
        grid=grid,
        in_specs=[
            pl.BlockSpec((8, f_pad), lambda i: (0, 0)),        # w2 (resident)
            pl.BlockSpec((f_pad, n_pad), lambda i: (0, 0)),    # x_T full (resident)
            pl.BlockSpec((f_pad, tile), lambda i: (0, i)),     # x_T dst tile
            pl.BlockSpec((n_pad, tile), lambda i: (0, i)),     # adj_T column tile
        ],
        out_specs=pl.BlockSpec((1, tile), lambda i: (0, i)),   # lane-dense scores
        compiler_params=pltpu.CompilerParams(
            dimension_semantics=("parallel",),
            vmem_limit_bytes=vmem_limit),
    )(w2, x_t, x_t, adj_t_bf16)


def sag_pooling(x, edge_index, params, ratio=0.5, multiplier=1.0):
    """Mirrors SAGPooling.forward for a single graph (batch = zeros)."""
    N, F = x.shape
    src, dst = edge_index[0], edge_index[1]

    n_pad = _round_up(max(N, 1), 128)
    f_pad = _round_up(F + 1, 128)          # +1 for the constant bias feature row

    # Densified TRANSPOSED adjacency: adj_T[src, dst] = #edges src -> dst.
    # Edge counts are small integers -> exact in bf16 (half the DMA bytes).
    # TODO(synk): for very large/sparse graphs, replace the dense adjacency with
    # an edge-list segment-sum path (O(E) instead of O(N^2)).
    adj_t = (jnp.zeros((n_pad, n_pad), jnp.float32)
             .at[src, dst].add(1.0)).astype(jnp.bfloat16)

    # x transposed + a constant ones row that carries the lin_rel bias.
    x_t = jnp.zeros((f_pad, n_pad), jnp.float32)
    x_t = x_t.at[:F, :N].set(x.astype(jnp.float32).T)
    x_t = x_t.at[F, :].set(1.0)

    # Stacked projection weights (8 sublane-aligned rows; rows 2..7 are zero).
    w2 = jnp.zeros((8, f_pad), jnp.float32)
    w2 = w2.at[0, :F].set(params["w_rel"][:, 0])
    w2 = w2.at[1, :F].set(params["w_root"][:, 0])
    w2 = w2.at[1, F].set(params["b_rel"][0])      # bias rides on the ones-feature

    score_row = sag_pool_scores(adj_t, x_t, w2)   # [1, n_pad]
    score = score_row[0, :N]                      # .view(-1), padded cols dropped

    # topk(score, ratio, batch): k = ceil(ratio * N), descending order.
    k = int(math.ceil(ratio * N))
    top_scores, perm = jax.lax.top_k(score, k)

    # Gate applied at gather time: only k rows ever consumed.
    x_out = x[perm] * top_scores[:, None]
    if multiplier != 1.0:
        x_out = multiplier * x_out

    batch_out = jnp.zeros((k,), jnp.int32)

    # filter_adj: keep edges with both endpoints retained, remap indices.
    # TODO(synk): boolean-mask indexing is dynamic-shape (eager only); pad to E
    # with a sentinel if this must run under jax.jit.
    mapping = jnp.full((N,), -1, jnp.int32).at[perm].set(
        jnp.arange(k, dtype=jnp.int32))
    keep = (mapping[src] >= 0) & (mapping[dst] >= 0)
    edge_index_out = jnp.stack([mapping[src][keep], mapping[dst][keep]])

    # edge_attr is None in this configuration.
    return x_out, edge_index_out, None, batch_out, perm, top_scores


if __name__ == "__main__":
    key = jax.random.PRNGKey(0)
    k_x, k_e, k_wr, k_br, k_wn = jax.random.split(key, 5)

    N = 16          # number of nodes
    F = 32          # in_channels
    E = 48          # number of edges

    x = jax.random.normal(k_x, (N, F), dtype=jnp.float32)
    edge_index = jax.random.randint(k_e, (2, E), 0, N, dtype=jnp.int32)

    # GraphConv(in_channels=F, out_channels=1) parameters, deterministic init.
    bound = 1.0 / math.sqrt(F)
    params = {
        # lin_rel: Linear(F, 1, bias=True)  -> stored as [F, 1]
        "w_rel": jax.random.uniform(k_wr, (F, 1), jnp.float32, -bound, bound),
        "b_rel": jax.random.uniform(k_br, (1,), jnp.float32, -bound, bound),
        # lin_root: Linear(F, 1, bias=False)
        "w_root": jax.random.uniform(k_wn, (F, 1), jnp.float32, -bound, bound),
    }

    outs = sag_pooling(x, edge_index, params, ratio=0.5, multiplier=1.0)
    x_out, ei_out, edge_attr_out, batch_out, perm, score_perm = outs
    jax.block_until_ready(x_out)
    jax.block_until_ready(score_perm)

    # Sanity check against a pure-JAX reference of the GraphConv + gate path.
    adj_ref = jnp.zeros((N, N), jnp.float32).at[edge_index[1], edge_index[0]].add(1.0)
    y_ref = (adj_ref @ x) @ params["w_rel"] + params["b_rel"] + x @ params["w_root"]
    score_ref = jnp.tanh(y_ref[:, 0])
    x_ref_out = (x * score_ref[:, None])[perm]
    assert jnp.allclose(score_perm, score_ref[perm], atol=1e-5, rtol=1e-5)
    assert jnp.allclose(x_out, x_ref_out, atol=1e-5, rtol=1e-5)
    assert batch_out.shape[0] == perm.shape[0]

    print("KERNEL_OK")
</pallas_src>

<mosaic_0001>
module attributes {stable_mosaic.version = 11 : i64} {
  func.func @_sag_score_kernel(%arg0: i32, %arg1: memref<8x128xf32, #tpu.memory_space<vmem>>, %arg2: memref<128x128xf32, #tpu.memory_space<vmem>>, %arg3: memref<128x128xf32, #tpu.memory_space<vmem>>, %arg4: memref<128x128xbf16, #tpu.memory_space<vmem>>, %arg5: memref<1x128xf32, #tpu.memory_space<vmem>>) attributes {dimension_semantics = [#tpu.dimension_semantics<parallel>], iteration_bounds = array<i64: 1>, scalar_prefetch = 0 : i64, scratch_operands = 0 : i64, tpu.core_type = #tpu.core_type<tc>, window_params = [{pipeline_mode = #tpu.pipeline_mode<synchronous>, transform_indices = @transform_0, window_bounds = array<i64: 8, 128>}, {pipeline_mode = #tpu.pipeline_mode<synchronous>, transform_indices = @transform_1, window_bounds = array<i64: 128, 128>}, {transform_indices = @transform_2, window_bounds = array<i64: 128, 128>}, {transform_indices = @transform_3, window_bounds = array<i64: 128, 128>}, {transform_indices = @transform_4, window_bounds = array<i64: 1, 128>}]} {
    %c0 = arith.constant 0 : index
    %c0_0 = arith.constant 0 : index
    %0 = vector.load %arg1[%c0, %c0_0] : memref<8x128xf32, #tpu.memory_space<vmem>>, vector<8x128xf32>
    %c0_1 = arith.constant 0 : index
    %c0_2 = arith.constant 0 : index
    %1 = vector.load %arg2[%c0_1, %c0_2] : memref<128x128xf32, #tpu.memory_space<vmem>>, vector<128x128xf32>
    %cst = arith.constant dense<0.000000e+00> : vector<8x128xf32>
    %2 = tpu.matmul %0, %1, %cst {dimension_numbers = #tpu.dot_dimension_numbers<[1], [0], [0], [1], [0, 0, 1, 1], [], []>} : vector<8x128xf32>, vector<128x128xf32>, vector<8x128xf32> -> vector<8x128xf32>
    %c0_3 = arith.constant 0 : index
    %c0_4 = arith.constant 0 : index
    %3 = vector.load %arg3[%c0_3, %c0_4] : memref<128x128xf32, #tpu.memory_space<vmem>>, vector<128x128xf32>
    %cst_5 = arith.constant dense<0.000000e+00> : vector<8x128xf32>
    %4 = tpu.matmul %0, %3, %cst_5 {dimension_numbers = #tpu.dot_dimension_numbers<[1], [0], [0], [1], [0, 0, 1, 1], [], []>} : vector<8x128xf32>, vector<128x128xf32>, vector<8x128xf32> -> vector<8x128xf32>
    %c0_6 = arith.constant 0 : index
    %c0_7 = arith.constant 0 : index
    %5 = vector.load %arg4[%c0_6, %c0_7] : memref<128x128xbf16, #tpu.memory_space<vmem>>, vector<128x128xbf16>
    %6 = arith.extf %5 : vector<128x128xbf16> to vector<128x128xf32>
    %cst_8 = arith.constant dense<0.000000e+00> : vector<8x128xf32>
    %7 = tpu.matmul %2, %6, %cst_8 {dimension_numbers = #tpu.dot_dimension_numbers<[1], [0], [0], [1], [0, 0, 1, 1], [], []>} : vector<8x128xf32>, vector<128x128xf32>, vector<8x128xf32> -> vector<8x128xf32>
    %8 = vector.extract_strided_slice %7 {offsets = [0, 0], sizes = [1, 128], strides = [1, 1]} : vector<8x128xf32> to vector<1x128xf32>
    %9 = vector.extract_strided_slice %4 {offsets = [1, 0], sizes = [1, 128], strides = [1, 1]} : vector<8x128xf32> to vector<1x128xf32>
    %10 = arith.addf %8, %9 : vector<1x128xf32>
    %11 = math.tanh %10 : vector<1x128xf32>
    %c0_9 = arith.constant 0 : index
    %c0_10 = arith.constant 0 : index
    %12 = vector.load %arg5[%c0_9, %c0_10] : memref<1x128xf32, #tpu.memory_space<vmem>>, vector<1x128xf32>
    tpu.vector_store %arg5[%c0_9, %c0_10], %11 {strides = array<i32>} : memref<1x128xf32, #tpu.memory_space<vmem>>, vector<1x128xf32>,
    return
  }
  func.func @transform_0(%arg0: i32) -> (i32, i32) {
    %c0_i32 = arith.constant 0 : i32
    %c0_i32_0 = arith.constant 0 : i32
    %c0_i32_1 = arith.constant 0 : i32
    return %c0_i32, %c0_i32_0 : i32, i32
  }
  func.func @transform_1(%arg0: i32) -> (i32, i32) {
    %c0_i32 = arith.constant 0 : i32
    %c0_i32_0 = arith.constant 0 : i32
    %c0_i32_1 = arith.constant 0 : i32
    return %c0_i32, %c0_i32_0 : i32, i32
  }
  func.func @transform_2(%arg0: i32) -> (i32, i32) {
    %c0_i32 = arith.constant 0 : i32
    %c0_i32_0 = arith.constant 0 : i32
    return %c0_i32, %arg0 : i32, i32
  }
  func.func @transform_3(%arg0: i32) -> (i32, i32) {
    %c0_i32 = arith.constant 0 : i32
    %c0_i32_0 = arith.constant 0 : i32
    return %c0_i32, %arg0 : i32, i32
  }
  func.func @transform_4(%arg0: i32) -> (i32, i32) {
    %c0_i32 = arith.constant 0 : i32
    %c0_i32_0 = arith.constant 0 : i32
    return %c0_i32, %arg0 : i32, i32
  }
}

</mosaic_0001>

<bundles_post_ra>
// kernel: tpu_custom_call.1
= control target key start
LH: loop header
LB: loop body
LE: loop exit
PB: predicated region body
PF: predicated region fallthrough
CT: control target
= control target key end

     0   :  { %9 = vsyncpa [#allocation3], 0  ;;  %s901_s0 = inlined_call_operand.hbm [shape: f32[8,128], index: 0, kind: input, shape index: {}]   ;;  %s902_s1 = inlined_call_operand.hbm [shape: f32[128,128], index: 1, kind: input, shape index: {}]   ;;  %s903_s2 = inlined_call_operand.hbm [shape: f32[128,128], index: 2, kind: input, shape index: {}]   ;;  %s904_s3 = inlined_call_operand.hbm [shape: bf16[128,128], index: 3, kind: input, shape index: {}]   ;;  %s905_s4 = inlined_call_operand.hbm [shape: f32[1,128], index: 4, kind: output, shape index: {}]  }
   0x1   :  { %10 = vsyncpa [#allocation6], 0 }
   0x2   :  { %11 = vsyncpa [#allocation9], 0 }
   0x3   :  { %12 = vsyncpa [#allocation4], 0  ;;  %s768_s15 = smov [#allocation5]   ;;  %s650_s19 = scalar_lea.hbm %s902_s1, 2048 }
   0x4   :  { %s28_s16 = sshll.u32 %s768_s15, 4  ;;  %p651_p0 = scmp.ne.s32.totalorder %s902_s1, %s650_s19  ;;  %s29_s16 = int_to_ptr.vmem [resolvable:$true] %s28_s16 }
   0x5   :  { %p654_p1 = scmp.lt.u32.totalorder %s650_s19, %s902_s1 }
   0x7   :  { %p656_p2 = pnand %p654_p1, %p651_p0 }
   0x9   :  { %659 = shalt.err (!%p656_p2)
}
   0xa   :  { %s660_s24 = scalar_lea.vmem %s29_s16, 2048  ;;  %p665_p4 = scmp.lt.s32.totalorder %s29_s16, %s29_s16 }
   0xb   :  { %p661_p3 = scmp.ne.s32.totalorder %s29_s16, %s660_s24  ;;  %p666_p5 = scmp.lt.s32.totalorder %s660_s24, %s660_s24 }
   0xd   :  { %p667_p6 = por %p666_p5, %p665_p4 }
   0xf   :  { %p668_p7 = pnand %p667_p6, %p661_p3 }
  0x11   :  { %671 = shalt.err (!%p668_p7)
}
  0x12   :  { %s769_s25 = smov 128   ;;  %s770_s26 = smov 8  }
  0x13   :  { %34 = dma.hbm_to_vmem [thread:$0]  %s902_s1, 2048, %s29_s16, [#allocation6], %s769_s25, %s769_s25, %s770_s26  }
  0x14   :  { %s771_s29 = smov [#allocation2]   ;;  %s772_s5 = smov [#allocation7]  }
  0x15   :  { %s19_s30 = sshll.u32 %s771_s29, 4  ;;  %s40_s6 = sshll.u32 %s772_s5, 4  ;;  %s20_s30 = int_to_ptr.vmem [resolvable:$true] %s19_s30  ;;  %s41_s6 = int_to_ptr.vmem [resolvable:$true] %s40_s6 }
  0x16   :  { %s672_s9 = scalar_lea.hbm %s901_s0, 128 }
  0x17   :  { %p673_p8 = scmp.ne.s32.totalorder %s901_s0, %s672_s9  ;;  %p676_p9 = scmp.lt.u32.totalorder %s672_s9, %s901_s0 }
  0x19   :  { %p678_p10 = pnand %p676_p9, %p673_p8 }
  0x1b   :  { %681 = shalt.err (!%p678_p10)
}
  0x1c   :  { %s682_s1 = scalar_lea.vmem %s20_s30, 128  ;;  %p687_p12 = scmp.lt.s32.totalorder %s20_s30, %s20_s30 }
  0x1d   :  { %p683_p11 = scmp.ne.s32.totalorder %s20_s30, %s682_s1  ;;  %p688_p13 = scmp.lt.s32.totalorder %s682_s1, %s682_s1 }
  0x1f   :  { %p689_p0 = por %p688_p13, %p687_p12 }
  0x21   :  { %p690_p1 = pnand %p689_p0, %p683_p11 }
  0x23   :  { %693 = shalt.err (!%p690_p1)
}
  0x24   :  { %22 = dma.hbm_to_vmem [thread:$0]  %s901_s0, 128, %s20_s30, [#allocation3]  }
  0x25   :  { %s694_s18 = scalar_lea.hbm %s903_s2, 2048 }
  0x26   :  { %p695_p2 = scmp.ne.s32.totalorder %s903_s2, %s694_s18  ;;  %p698_p3 = scmp.lt.u32.totalorder %s694_s18, %s903_s2 }
  0x28   :  { %p700_p4 = pnand %p698_p3, %p695_p2 }
  0x2a   :  { %703 = shalt.err (!%p700_p4)
}
  0x2b   :  { %s704_s23 = scalar_lea.vmem %s41_s6, 2048  ;;  %p709_p6 = scmp.lt.s32.totalorder %s41_s6, %s41_s6 }
  0x2c   :  { %p705_p5 = scmp.ne.s32.totalorder %s41_s6, %s704_s23  ;;  %p710_p7 = scmp.lt.s32.totalorder %s704_s23, %s704_s23 }
  0x2e   :  { %p711_p8 = por %p710_p7, %p709_p6 }
  0x30   :  { %p712_p9 = pnand %p711_p8, %p705_p5 }
  0x32   :  { %715 = shalt.err (!%p712_p9)
}
  0x33   :  { %46 = dma.hbm_to_vmem [thread:$0]  %s903_s2, 2048, %s41_s6, [#allocation6], %s769_s25, %s769_s25, %s770_s26  }
  0x34   :  { %s773_s27 = smov [#allocation8]   ;;  %s716_s5 = scalar_lea.hbm %s904_s3, 1024 }
  0x35   :  { %s52_s28 = sshll.u32 %s773_s27, 4  ;;  %p717_p10 = scmp.ne.s32.totalorder %s904_s3, %s716_s5  ;;  %s53_s28 = int_to_ptr.vmem [resolvable:$true] %s52_s28 }
  0x36   :  { %p720_p11 = scmp.lt.u32.totalorder %s716_s5, %s904_s3 }
  0x38   :  { %p722_p12 = pnand %p720_p11, %p717_p10 }
  0x3a   :  { %725 = shalt.err (!%p722_p12)
}
  0x3b   :  { %s726_s11 = scalar_lea.vmem %s53_s28, 1024  ;;  %p731_p0 = scmp.lt.s32.totalorder %s53_s28, %s53_s28 }
  0x3c   :  { %p727_p13 = scmp.ne.s32.totalorder %s53_s28, %s726_s11  ;;  %p732_p1 = scmp.lt.s32.totalorder %s726_s11, %s726_s11 }
  0x3e   :  { %p733_p2 = por %p732_p1, %p731_p0 }
  0x40   :  { %p734_p3 = pnand %p733_p2, %p727_p13 }
  0x42   :  { %737 = shalt.err (!%p734_p3)
}
  0x43   :  { %s774_s2 = smov 64   ;;  %s775_s25 = smov 4  }
  0x44   :  { %58 = dma.hbm_to_vmem [thread:$0]  %s904_s3, 1024, %s53_s28, [#allocation9], %s774_s2, %s774_s2, %s775_s25  }
  0x45   :  { %760 = dma.done.wait [#allocation3], 128  }
  0x46   :  { %761 = vsyncadd [#allocation3], 4294967168 }
  0x47   :  { %762 = dma.done.wait [#allocation6], 4096  }
  0x48   :  { %763 = vsyncadd [#allocation6], 4294963200 }
  0x49   :  { %764 = dma.done.wait [#allocation9], 1024  }
  0x4a   :  { %765 = vsyncadd [#allocation9], 4294966272  ;;  %v776_v0 = vmov 0.0|0.0   ;;  %vm777_vm0 = vmmov 0   ;;  %v778_v1 = vmov 0.0   ;;  %v72_v2 = vld [vmem:[#allocation5] sm:$0xff] }
  0x4b   :  { %564 = vmatprep.subr.bf16.mxu0 %v776_v0  ;;  %491 = vmatprep.mubr.msk.f32.mxu0 %vm777_vm0, %v778_v1  ;;  %v73_v3 = vld [vmem:[#allocation5 + $0x8] sm:$0xff]  ;;  %v74_v4 = vld [vmem:[#allocation5 + $0x10] sm:$0xff]  ;;  %v75_v6 = vld [vmem:[#allocation5 + $0x18] sm:$0xff]  ;;  %s779_s3 = smov [#allocation10]  }
  0x4c   :  { %588 = vmatprep.subr.bf16.mxu1 %v776_v0  ;;  %526 = vmatprep.mubr.msk.f32.mxu1 %vm777_vm0, %v778_v1  ;;  %v565_v5 = vpack.c.bf16 %v73_v3, %v72_v2  ;;  %v568_v7 = vpack.c.bf16 %v75_v6, %v74_v4  ;;  %v76_v8 = vld [vmem:[#allocation5 + $0x20] sm:$0xff]  ;;  %v77_v9 = vld [vmem:[#allocation5 + $0x28] sm:$0xff]  ;;  %v160_v12 = vld [vmem:[#allocation7 + $0x10] sm:$0xff]  ;;  %s358_s12 = sshll.u32 %s779_s3, 4  ;;  %s359_s12 = int_to_ptr.vmem [resolvable:$true] %s358_s12 }
  0x4d   :  { %v158_v10 = vld [vmem:[#allocation7] sm:$0xff]  ;;  %v159_v11 = vld [vmem:[#allocation7 + $0x8] sm:$0xff]  ;;  %v571_v13 = vpack.c.bf16 %v77_v9, %v76_v8  ;;  %v161_v15 = vld [vmem:[#allocation7 + $0x18] sm:$0xff]  ;;  %s738_s13 = scalar_lea.vmem %s359_s12, 16  ;;  %s742_s1 = scalar_lea.vmem %s359_s12, 32 }
  0x4e   :  { %566 = vmatpush3.bf16.msra.mxu0 %v565_v5  ;;  %v589_v14 = vpack.c.bf16 %v159_v11, %v158_v10  ;;  %v78_v16 = vld [vmem:[#allocation5 + $0x30] sm:$0xff]  ;;  %v79_v17 = vld [vmem:[#allocation5 + $0x38] sm:$0xff]  ;;  %v592_v18 = vpack.c.bf16 %v161_v15, %v160_v12  ;;  %v162_v19 = vld [vmem:[#allocation7 + $0x20] sm:$0xff]  ;;  %p739_p4 = scmp.ne.s32.totalorder %s359_s12, %s738_s13  ;;  %p743_p5 = scmp.lt.s32.totalorder %s359_s12, %s359_s12 }
  0x4f   :  { %567 = vmatprep.subr.bf16.mxu0 %v776_v0  ;;  %v163_v20 = vld [vmem:[#allocation7 + $0x28] sm:$0xff]  ;;  %v574_v21 = vpack.c.bf16 %v79_v17, %v78_v16  ;;  %v80_v22 = vld [vmem:[#allocation5 + $0x40] sm:$0xff]  ;;  %v164_v25 = vld [vmem:[#allocation7 + $0x30] sm:$0xff]  ;;  %p744_p6 = scmp.lt.s32.totalorder %s742_s1, %s738_s13 }
  0x50   :  { %590 = vmatpush3.bf16.msra.mxu1 %v589_v14  ;;  %v81_v23 = vld [vmem:[#allocation5 + $0x48] sm:$0xff]  ;;  %v595_v24 = vpack.c.bf16 %v163_v20, %v162_v19  ;;  %v165_v26 = vld [vmem:[#allocation7 + $0x38] sm:$0xff]  ;;  %v82_v28 = vld [vmem:[#allocation5 + $0x50] sm:$0xff] }
  0x51   :  { %591 = vmatprep.subr.bf16.mxu1 %v776_v0  ;;  %v577_v27 = vpack.c.bf16 %v81_v23, %v80_v22  ;;  %v83_v29 = vld [vmem:[#allocation5 + $0x58] sm:$0xff]  ;;  %v598_v30 = vpack.c.bf16 %v165_v26, %v164_v25  ;;  %v166_v31 = vld [vmem:[#allocation7 + $0x40] sm:$0xff]  ;;  %v167_v32 = vld [vmem:[#allocation7 + $0x48] sm:$0xff]  ;;  %p745_p7 = por %p744_p6, %p743_p5 }
  0x52   :  { %569 = vmatpush3.bf16.msra.mxu0 %v568_v7  ;;  %v580_v33 = vpack.c.bf16 %v83_v29, %v82_v28  ;;  %v84_v34 = vld [vmem:[#allocation5 + $0x60] sm:$0xff]  ;;  %v85_v35 = vld [vmem:[#allocation5 + $0x68] sm:$0xff]  ;;  %v601_v36 = vpack.c.bf16 %v167_v32, %v166_v31  ;;  %v168_v37 = vld [vmem:[#allocation7 + $0x50] sm:$0xff] }
  0x53   :  { %570 = vmatprep.subr.bf16.mxu0 %v776_v0  ;;  %v169_v38 = vld [vmem:[#allocation7 + $0x58] sm:$0xff]  ;;  %v583_v39 = vpack.c.bf16 %v85_v35, %v84_v34  ;;  %v86_v40 = vld [vmem:[#allocation5 + $0x70] sm:$0xff]  ;;  %v170_v43 = vld [vmem:[#allocation7 + $0x60] sm:$0xff]  ;;  %p746_p8 = pnand %p745_p7, %p739_p4 }
  0x54   :  { %593 = vmatpush3.bf16.msra.mxu1 %v592_v18  ;;  %v87_v41 = vld [vmem:[#allocation5 + $0x78] sm:$0xff]  ;;  %v604_v42 = vpack.c.bf16 %v169_v38, %v168_v37  ;;  %v171_v44 = vld [vmem:[#allocation7 + $0x68] sm:$0xff]  ;;  %v172_v47 = vld [vmem:[#allocation7 + $0x70] sm:$0xff] }
  0x55   :  { %594 = vmatprep.subr.bf16.mxu1 %v776_v0  ;;  %v586_v45 = vpack.c.bf16 %v87_v41, %v86_v40  ;;  %v607_v46 = vpack.c.bf16 %v171_v44, %v170_v43  ;;  %v173_v48 = vld [vmem:[#allocation7 + $0x78] sm:$0xff]  ;;  %v370_v50 = vld [vmem:[#allocation8] sm:$0xff]   ;;  %v401_v52 = vld [vmem:[#allocation8 + $0x8] sm:$0xff]  }
  0x56   :  { %572 = vmatpush3.bf16.msra.mxu0 %v571_v13  ;;  %v71_v49 = vld [vmem:[#allocation2] sm:$0xff]  ;;  %v610_v51 = vpack.c.bf16 %v173_v48, %v172_v47  ;;  %v402_v53 = vld [vmem:[#allocation8 + $0x10] sm:$0xff]   ;;  %v404_v55 = vld [vmem:[#allocation8 + $0x20] sm:$0xff]  }
  0x57   :  { %573 = vmatprep.subr.bf16.mxu0 %v776_v0  ;;  %v403_v54 = vld [vmem:[#allocation8 + $0x18] sm:$0xff]   ;;  %v405_v56 = vld [vmem:[#allocation8 + $0x28] sm:$0xff]   ;;  %v406_v57 = vld [vmem:[#allocation8 + $0x30] sm:$0xff]  }
  0x58   :  { %596 = vmatpush3.bf16.msra.mxu1 %v595_v24  ;;  %v407_v58 = vld [vmem:[#allocation8 + $0x38] sm:$0xff]  }
  0x59   :  { %597 = vmatprep.subr.bf16.mxu1 %v776_v0 }
  0x5a   :  { %575 = vmatpush3.bf16.msra.mxu0 %v574_v21 }
  0x5b   :  { %576 = vmatprep.subr.bf16.mxu0 %v776_v0 }
  0x5c   :  { %599 = vmatpush3.bf16.msra.mxu1 %v598_v30 }
  0x5d   :  { %600 = vmatprep.subr.bf16.mxu1 %v776_v0 }
  0x5e   :  { %578 = vmatpush3.bf16.msra.mxu0 %v577_v27 }
  0x5f   :  { %579 = vmatprep.subr.bf16.mxu0 %v776_v0 }
  0x60   :  { %602 = vmatpush3.bf16.msra.mxu1 %v601_v36 }
  0x61   :  { %603 = vmatprep.subr.bf16.mxu1 %v776_v0 }
  0x62   :  { %581 = vmatpush3.bf16.msra.mxu0 %v580_v33 }
  0x63   :  { %582 = vmatprep.subr.bf16.mxu0 %v776_v0 }
  0x64   :  { %605 = vmatpush3.bf16.msra.mxu1 %v604_v42 }
  0x65   :  { %606 = vmatprep.subr.bf16.mxu1 %v776_v0 }
  0x66   :  { %584 = vmatpush3.bf16.msra.mxu0 %v583_v39 }
  0x67   :  { %585 = vmatprep.subr.bf16.mxu0 %v776_v0 }
  0x68   :  { %608 = vmatpush3.bf16.msra.mxu1 %v607_v46 }
  0x69   :  { %609 = vmatprep.subr.bf16.mxu1 %v776_v0 }
  0x6a   :  { %587 = vmatpush3.bf16.msra.mxu0 %v586_v45 }
  0x6b   :  { %612 = vmatprep.subr.bf16.mxu0 %v776_v0 }
  0x6c   :  { %611 = vmatpush3.bf16.msra.mxu1 %v610_v51 }
  0x6d   :  { %492 = vmatmul.mubr.f32.vlgmr.msra.gmra.mrb[0].mxu0 %v71_v49 }
  0x6e   :  { %614 = vmatpush3.bf16.msra.mxu0 %v370_v50  ;;  %561 = vmatprep.mubr.msk.f32.mxu0 %vm777_vm0, %v778_v1 }
  0x6f   :  { %615 = vmatprep.subr.bf16.mxu0 %v776_v0  ;;  %527 = vmatmul.mubr.f32.vlgmr.msra.gmra.mrb[0].mxu1 %v71_v49 }
  0x72   :  { %617 = vmatpush3.bf16.msra.mxu0 %v401_v52 }
  0x73   :  { %618 = vmatprep.subr.bf16.mxu0 %v776_v0 }
  0x76   :  { %620 = vmatpush3.bf16.msra.mxu0 %v402_v53 }
  0x77   :  { %621 = vmatprep.subr.bf16.mxu0 %v776_v0 }
  0x7a   :  { %623 = vmatpush3.bf16.msra.mxu0 %v403_v54 }
  0x7b   :  { %624 = vmatprep.subr.bf16.mxu0 %v776_v0 }
  0x7e   :  { %626 = vmatpush3.bf16.msra.mxu0 %v404_v55 }
  0x7f   :  { %627 = vmatprep.subr.bf16.mxu0 %v776_v0 }
  0x82   :  { %629 = vmatpush3.bf16.msra.mxu0 %v405_v56 }
  0x83   :  { %630 = vmatprep.subr.bf16.mxu0 %v776_v0 }
  0x86   :  { %632 = vmatpush3.bf16.msra.mxu0 %v406_v57 }
  0x87   :  { %633 = vmatprep.subr.bf16.mxu0 %v776_v0 }
  0x8a   :  { %635 = vmatpush3.bf16.msra.mxu0 %v407_v58 }
 0x140   :  { %v154_v59 = vpop.f32.mrb[0].mxu0 }
 0x141   :  { %v493_v60 = vpop.f32.mrb[1].mxu0  ;;  %562 = vmatmul.mubr.f32.vlgmr.msra.gmra.mrb[2].mxu0 %v154_v59 }
 0x142   :  { %v240_v61 = vpop.f32.mrb[0].mxu1 }
 0x143   :  { %v528_v62 = vpop.f32.mrb[1].mxu1  ;;  %v347_v63 = vrot.slane %v240_v61, 1 }
 0x214   :  { %v342_v1 = vpop.f32.mrb[2].mxu0 }
 0x215   :  { %v349_v2 = vadd.f32 %v347_v63, %v342_v1  ;;  %v563_v3 = vpop.f32.mrb[3].mxu0 }
 0x217   :  { %648 = vtanh.f32 %v349_v2 }
 0x221   :  { %v649_v4 = vpop.eup %648 }
 0x222   :  { %351 = vst [vmem:[#allocation10] sm:$0x1] %v649_v4 }
 0x223   :  { %749 = shalt.err (!%p746_p8)
}
 0x224   :  { %s750_s16 = scalar_lea.hbm %s905_s4, 16 }
 0x225   :  { %p751_p9 = scmp.ne.s32.totalorder %s905_s4, %s750_s16  ;;  %p754_p10 = scmp.lt.u32.totalorder %s750_s16, %s905_s4 }
 0x227   :  { %p756_p11 = pnand %p754_p10, %p751_p9 }
 0x229   :  { %759 = shalt.err (!%p756_p11)
}
 0x22a   :  { %361 = dma.vmem_to_hbm [thread:$0]  %s359_s12, 16, %s905_s4, [#allocation4]  }
 0x22b   :  { %766 = dma.done.wait [#allocation4], 16  }
 0x22c   :  { %767 = vsyncadd [#allocation4], 4294967280 }
 0x22d   :  { %365 = vsyncpa [#allocation3], 1 }
 0x22e   :  { %366 = vsyncpa [#allocation6], 1 }
 0x22f   :  { %367 = vsyncpa [#allocation9], 1 }
 0x230   :  { %368 = vsyncpa [#allocation4], 1 }

</bundles_post_ra>
